<compile_context>
chip_gen: v7x
topology: tpu7x:2x2x1
jax: 0.10.0
libtpu: 0.0.40
codegen_flags: <defaults>
</compile_context>

<pallas_src>
import functools

import jax
import jax.numpy as jnp
from jax import lax
from jax.experimental import pallas as pl
from jax.experimental.pallas import tpu as pltpu


def _mha_kernel(q_ref, k_ref, v_ref, o_ref, *, heads, scale):
    # q_ref: (1, I, heads*d), k_ref/v_ref: (1, J, heads*d), o_ref: (1, I, heads*d)
    q = q_ref[0]                                  # (I, heads*d), native dtype
    k = k_ref[0]                                  # (J, heads*d)
    v = v_ref[0]                                  # (J, heads*d)

    # Fold the softmax scale into Q (I*heads*d multiplies instead of I*J*heads).
    q = q * jnp.asarray(scale, dtype=q.dtype)

    hd = q.shape[-1]
    d = hd // heads

    outs = []
    for h in range(heads):                        # static unroll over heads
        qh = q[:, h * d:(h + 1) * d]              # (I, d)
        kh = k[:, h * d:(h + 1) * d]              # (J, d)
        vh = v[:, h * d:(h + 1) * d]              # (J, d)

        # scores = Q_h @ K_h^T  (contract last axis of both; no explicit transpose)
        dots = lax.dot_general(
            qh, kh,
            dimension_numbers=(((1,), (1,)), ((), ())),
            preferred_element_type=jnp.float32,
        )                                         # (I, J), f32

        # Numerically stable softmax, normalization deferred past the PV matmul.
        m = jnp.max(dots, axis=-1, keepdims=True)         # (I, 1)
        p = jnp.exp(dots - m)                             # (I, J), f32
        denom = jnp.sum(p, axis=-1, keepdims=True)        # (I, 1)

        pv = jnp.dot(p.astype(vh.dtype), vh,
                     preferred_element_type=jnp.float32)  # (I, d), f32

        # Finalize with EUP reciprocal (moves the divide off the (I, J) tensor).
        out_h = pv * pl.reciprocal(denom, approx=True)    # (I, d)
        outs.append(out_h)

    # Single lane-dense store of the full (I, heads*d) output slab.
    o_ref[0] = jnp.concatenate(outs, axis=-1).astype(o_ref.dtype)


def multi_head_attention(Q, K, V, *, dim, heads):
    """Pallas implementation of MultiHeadAttention.forward.

    Q: (B, I, heads*d), K: (B, J, heads*d), V: (B, J, heads*d)
    returns: (B, I, heads*d)
    """
    scale = (dim / heads) ** (-0.5)

    B, I, hd = Q.shape
    _, J, _ = K.shape
    d = hd // heads
    assert hd == heads * d

    kernel = functools.partial(_mha_kernel, heads=heads, scale=scale)

    itemsize = jnp.dtype(Q.dtype).itemsize
    cost = pl.CostEstimate(
        flops=4 * B * heads * I * J * d,              # QK^T + PV matmuls
        transcendentals=B * heads * I * J,            # exp()
        bytes_accessed=(Q.size + K.size + V.size + B * I * hd) * itemsize,
    )

    out = pl.pallas_call(
        kernel,
        out_shape=jax.ShapeDtypeStruct((B, I, hd), Q.dtype),
        grid_spec=pltpu.PrefetchScalarGridSpec(
            num_scalar_prefetch=0,
            grid=(B,),
            in_specs=[
                pl.BlockSpec((1, I, hd), lambda b: (b, 0, 0)),
                pl.BlockSpec((1, J, hd), lambda b: (b, 0, 0)),
                pl.BlockSpec((1, J, hd), lambda b: (b, 0, 0)),
            ],
            out_specs=pl.BlockSpec((1, I, hd), lambda b: (b, 0, 0)),
        ),
        compiler_params=pltpu.CompilerParams(
            dimension_semantics=("parallel",),
        ),
        cost_estimate=cost,
    )(Q, K, V)
    return out


def _reference(Q, K, V, *, dim, heads):
    """Pure-JAX reference mirroring the PyTorch module exactly."""
    scale = (dim / heads) ** (-0.5)
    B, I, hd = Q.shape
    _, J, _ = K.shape
    d = hd // heads
    q = Q.reshape(B, I, heads, d).transpose(0, 2, 1, 3)
    k = K.reshape(B, J, heads, d).transpose(0, 2, 1, 3)
    v = V.reshape(B, J, heads, d).transpose(0, 2, 1, 3)
    dots = jnp.einsum('bhid,bhjd->bhij', q, k) * scale
    attn = jax.nn.softmax(dots, axis=-1)
    out = jnp.einsum('bhij,bhjd->bhid', attn, v)
    return out.transpose(0, 2, 1, 3).reshape(B, I, heads * d)


if __name__ == "__main__":
    # Small shapes consistent with the module's forward:
    # B=2, seq (HW)=16, dim (heads*d)=32, heads=4 -> head_dim=8.
    # MultiHeadAttention has no trainable parameters, so nothing to initialize.
    B, HW, dim, heads = 2, 16, 32, 4

    key = jax.random.PRNGKey(0)
    kq, kk, kv = jax.random.split(key, 3)
    Q = jax.random.normal(kq, (B, HW, dim), dtype=jnp.float32)
    K = jax.random.normal(kk, (B, HW, dim), dtype=jnp.float32)
    V = jax.random.normal(kv, (B, HW, dim), dtype=jnp.float32)

    out = multi_head_attention(Q, K, V, dim=dim, heads=heads)
    out = jax.block_until_ready(out)

    ref = _reference(Q, K, V, dim=dim, heads=heads)
    assert out.shape == (B, HW, dim), out.shape
    # Tolerance accounts for the approximate (EUP) reciprocal used in the
    # deferred softmax normalization; outputs are O(1) softmax-weighted averages.
    assert jnp.allclose(out, ref, atol=1e-2, rtol=1e-2), \
        f"max abs err {jnp.max(jnp.abs(out - ref))}"

    print("KERNEL_OK")
</pallas_src>

<mosaic_0001>
module attributes {stable_mosaic.version = 11 : i64} {
  func.func @_mha_kernel(%arg0: i32, %arg1: memref<1x16x32xf32, #tpu.memory_space<vmem>>, %arg2: memref<1x16x32xf32, #tpu.memory_space<vmem>>, %arg3: memref<1x16x32xf32, #tpu.memory_space<vmem>>, %arg4: memref<1x16x32xf32, #tpu.memory_space<vmem>>) attributes {dimension_semantics = [#tpu.dimension_semantics<parallel>], iteration_bounds = array<i64: 2>, scalar_prefetch = 0 : i64, scratch_operands = 0 : i64, tpu.core_type = #tpu.core_type<tc>, window_params = [{transform_indices = @transform_0, window_bounds = array<i64: 1, 16, 32>}, {transform_indices = @transform_1, window_bounds = array<i64: 1, 16, 32>}, {transform_indices = @transform_2, window_bounds = array<i64: 1, 16, 32>}, {transform_indices = @transform_3, window_bounds = array<i64: 1, 16, 32>}]} {
    %c0 = arith.constant 0 : index
    %c0_0 = arith.constant 0 : index
    %c0_1 = arith.constant 0 : index
    %0 = vector.load %arg1[%c0, %c0_0, %c0_1] : memref<1x16x32xf32, #tpu.memory_space<vmem>>, vector<1x16x32xf32>
    %1 = vector.shape_cast %0 : vector<1x16x32xf32> to vector<16x32xf32>
    %c0_2 = arith.constant 0 : index
    %c0_3 = arith.constant 0 : index
    %c0_4 = arith.constant 0 : index
    %2 = vector.load %arg2[%c0_2, %c0_3, %c0_4] : memref<1x16x32xf32, #tpu.memory_space<vmem>>, vector<1x16x32xf32>
    %3 = vector.shape_cast %2 : vector<1x16x32xf32> to vector<16x32xf32>
    %c0_5 = arith.constant 0 : index
    %c0_6 = arith.constant 0 : index
    %c0_7 = arith.constant 0 : index
    %4 = vector.load %arg3[%c0_5, %c0_6, %c0_7] : memref<1x16x32xf32, #tpu.memory_space<vmem>>, vector<1x16x32xf32>
    %5 = vector.shape_cast %4 : vector<1x16x32xf32> to vector<16x32xf32>
    %cst = arith.constant 0.353553385 : f32
    %6 = vector.broadcast %cst : f32 to vector<16x32xf32>
    %7 = arith.mulf %1, %6 : vector<16x32xf32>
    %8 = vector.extract_strided_slice %7 {offsets = [0, 0], sizes = [16, 8], strides = [1, 1]} : vector<16x32xf32> to vector<16x8xf32>
    %9 = vector.extract_strided_slice %3 {offsets = [0, 0], sizes = [16, 8], strides = [1, 1]} : vector<16x32xf32> to vector<16x8xf32>
    %10 = vector.extract_strided_slice %5 {offsets = [0, 0], sizes = [16, 8], strides = [1, 1]} : vector<16x32xf32> to vector<16x8xf32>
    %cst_8 = arith.constant dense<0.000000e+00> : vector<16x16xf32>
    %11 = tpu.matmul %8, %9, %cst_8 {dimension_numbers = #tpu.dot_dimension_numbers<[1], [1], [0], [0], [0, 0, 1, 0], [], []>} : vector<16x8xf32>, vector<16x8xf32>, vector<16x16xf32> -> vector<16x16xf32>
    %cst_9 = arith.constant dense<0xFF800000> : vector<16xf32>
    %12 = vector.multi_reduction <maximumf>, %11, %cst_9 [1] : vector<16x16xf32> to vector<16xf32>
    %13 = vector.shape_cast %12 : vector<16xf32> to vector<16x1xf32>
    %14 = vector.broadcast %13 : vector<16x1xf32> to vector<16x16xf32>
    %15 = arith.subf %11, %14 : vector<16x16xf32>
    %16 = math.exp %15 : vector<16x16xf32>
    %cst_10 = arith.constant dense<0.000000e+00> : vector<16xf32>
    %17 = vector.multi_reduction <add>, %16, %cst_10 [1] : vector<16x16xf32> to vector<16xf32>
    %18 = vector.shape_cast %17 : vector<16xf32> to vector<16x1xf32>
    %cst_11 = arith.constant dense<0.000000e+00> : vector<16x8xf32>
    %19 = tpu.matmul %16, %10, %cst_11 {dimension_numbers = #tpu.dot_dimension_numbers<[1], [0], [0], [1], [0, 0, 1, 1], [], []>} : vector<16x16xf32>, vector<16x8xf32>, vector<16x8xf32> -> vector<16x8xf32>
    %20 = tpu.reciprocal %18 {approx = true} : vector<16x1xf32> -> vector<16x1xf32>
    %21 = vector.broadcast %20 : vector<16x1xf32> to vector<16x8xf32>
    %22 = arith.mulf %19, %21 : vector<16x8xf32>
    %23 = vector.extract_strided_slice %7 {offsets = [0, 8], sizes = [16, 8], strides = [1, 1]} : vector<16x32xf32> to vector<16x8xf32>
    %24 = vector.extract_strided_slice %3 {offsets = [0, 8], sizes = [16, 8], strides = [1, 1]} : vector<16x32xf32> to vector<16x8xf32>
    %25 = vector.extract_strided_slice %5 {offsets = [0, 8], sizes = [16, 8], strides = [1, 1]} : vector<16x32xf32> to vector<16x8xf32>
    %cst_12 = arith.constant dense<0.000000e+00> : vector<16x16xf32>
    %26 = tpu.matmul %23, %24, %cst_12 {dimension_numbers = #tpu.dot_dimension_numbers<[1], [1], [0], [0], [0, 0, 1, 0], [], []>} : vector<16x8xf32>, vector<16x8xf32>, vector<16x16xf32> -> vector<16x16xf32>
    %cst_13 = arith.constant dense<0xFF800000> : vector<16xf32>
    %27 = vector.multi_reduction <maximumf>, %26, %cst_13 [1] : vector<16x16xf32> to vector<16xf32>
    %28 = vector.shape_cast %27 : vector<16xf32> to vector<16x1xf32>
    %29 = vector.broadcast %28 : vector<16x1xf32> to vector<16x16xf32>
    %30 = arith.subf %26, %29 : vector<16x16xf32>
    %31 = math.exp %30 : vector<16x16xf32>
    %cst_14 = arith.constant dense<0.000000e+00> : vector<16xf32>
    %32 = vector.multi_reduction <add>, %31, %cst_14 [1] : vector<16x16xf32> to vector<16xf32>
    %33 = vector.shape_cast %32 : vector<16xf32> to vector<16x1xf32>
    %cst_15 = arith.constant dense<0.000000e+00> : vector<16x8xf32>
    %34 = tpu.matmul %31, %25, %cst_15 {dimension_numbers = #tpu.dot_dimension_numbers<[1], [0], [0], [1], [0, 0, 1, 1], [], []>} : vector<16x16xf32>, vector<16x8xf32>, vector<16x8xf32> -> vector<16x8xf32>
    %35 = tpu.reciprocal %33 {approx = true} : vector<16x1xf32> -> vector<16x1xf32>
    %36 = vector.broadcast %35 : vector<16x1xf32> to vector<16x8xf32>
    %37 = arith.mulf %34, %36 : vector<16x8xf32>
    %38 = vector.extract_strided_slice %7 {offsets = [0, 16], sizes = [16, 8], strides = [1, 1]} : vector<16x32xf32> to vector<16x8xf32>
    %39 = vector.extract_strided_slice %3 {offsets = [0, 16], sizes = [16, 8], strides = [1, 1]} : vector<16x32xf32> to vector<16x8xf32>
    %40 = vector.extract_strided_slice %5 {offsets = [0, 16], sizes = [16, 8], strides = [1, 1]} : vector<16x32xf32> to vector<16x8xf32>
    %cst_16 = arith.constant dense<0.000000e+00> : vector<16x16xf32>
    %41 = tpu.matmul %38, %39, %cst_16 {dimension_numbers = #tpu.dot_dimension_numbers<[1], [1], [0], [0], [0, 0, 1, 0], [], []>} : vector<16x8xf32>, vector<16x8xf32>, vector<16x16xf32> -> vector<16x16xf32>
    %cst_17 = arith.constant dense<0xFF800000> : vector<16xf32>
    %42 = vector.multi_reduction <maximumf>, %41, %cst_17 [1] : vector<16x16xf32> to vector<16xf32>
    %43 = vector.shape_cast %42 : vector<16xf32> to vector<16x1xf32>
    %44 = vector.broadcast %43 : vector<16x1xf32> to vector<16x16xf32>
    %45 = arith.subf %41, %44 : vector<16x16xf32>
    %46 = math.exp %45 : vector<16x16xf32>
    %cst_18 = arith.constant dense<0.000000e+00> : vector<16xf32>
    %47 = vector.multi_reduction <add>, %46, %cst_18 [1] : vector<16x16xf32> to vector<16xf32>
    %48 = vector.shape_cast %47 : vector<16xf32> to vector<16x1xf32>
    %cst_19 = arith.constant dense<0.000000e+00> : vector<16x8xf32>
    %49 = tpu.matmul %46, %40, %cst_19 {dimension_numbers = #tpu.dot_dimension_numbers<[1], [0], [0], [1], [0, 0, 1, 1], [], []>} : vector<16x16xf32>, vector<16x8xf32>, vector<16x8xf32> -> vector<16x8xf32>
    %50 = tpu.reciprocal %48 {approx = true} : vector<16x1xf32> -> vector<16x1xf32>
    %51 = vector.broadcast %50 : vector<16x1xf32> to vector<16x8xf32>
    %52 = arith.mulf %49, %51 : vector<16x8xf32>
    %53 = vector.extract_strided_slice %7 {offsets = [0, 24], sizes = [16, 8], strides = [1, 1]} : vector<16x32xf32> to vector<16x8xf32>
    %54 = vector.extract_strided_slice %3 {offsets = [0, 24], sizes = [16, 8], strides = [1, 1]} : vector<16x32xf32> to vector<16x8xf32>
    %55 = vector.extract_strided_slice %5 {offsets = [0, 24], sizes = [16, 8], strides = [1, 1]} : vector<16x32xf32> to vector<16x8xf32>
    %cst_20 = arith.constant dense<0.000000e+00> : vector<16x16xf32>
    %56 = tpu.matmul %53, %54, %cst_20 {dimension_numbers = #tpu.dot_dimension_numbers<[1], [1], [0], [0], [0, 0, 1, 0], [], []>} : vector<16x8xf32>, vector<16x8xf32>, vector<16x16xf32> -> vector<16x16xf32>
    %cst_21 = arith.constant dense<0xFF800000> : vector<16xf32>
    %57 = vector.multi_reduction <maximumf>, %56, %cst_21 [1] : vector<16x16xf32> to vector<16xf32>
    %58 = vector.shape_cast %57 : vector<16xf32> to vector<16x1xf32>
    %59 = vector.broadcast %58 : vector<16x1xf32> to vector<16x16xf32>
    %60 = arith.subf %56, %59 : vector<16x16xf32>
    %61 = math.exp %60 : vector<16x16xf32>
    %cst_22 = arith.constant dense<0.000000e+00> : vector<16xf32>
    %62 = vector.multi_reduction <add>, %61, %cst_22 [1] : vector<16x16xf32> to vector<16xf32>
    %63 = vector.shape_cast %62 : vector<16xf32> to vector<16x1xf32>
    %cst_23 = arith.constant dense<0.000000e+00> : vector<16x8xf32>
    %64 = tpu.matmul %61, %55, %cst_23 {dimension_numbers = #tpu.dot_dimension_numbers<[1], [0], [0], [1], [0, 0, 1, 1], [], []>} : vector<16x16xf32>, vector<16x8xf32>, vector<16x8xf32> -> vector<16x8xf32>
    %65 = tpu.reciprocal %63 {approx = true} : vector<16x1xf32> -> vector<16x1xf32>
    %66 = vector.broadcast %65 : vector<16x1xf32> to vector<16x8xf32>
    %67 = arith.mulf %64, %66 : vector<16x8xf32>
    %68 = tpu.concatenate %22, %37, %52, %67 in 1 : vector<16x8xf32>, vector<16x8xf32>, vector<16x8xf32>, vector<16x8xf32> -> vector<16x32xf32>
    %c0_24 = arith.constant 0 : index
    %c0_25 = arith.constant 0 : index
    %c0_26 = arith.constant 0 : index
    %69 = vector.load %arg4[%c0_24, %c0_25, %c0_26] : memref<1x16x32xf32, #tpu.memory_space<vmem>>, vector<1x16x32xf32>
    %70 = vector.shape_cast %69 : vector<1x16x32xf32> to vector<16x32xf32>
    %71 = vector.shape_cast %68 : vector<16x32xf32> to vector<1x16x32xf32>
    tpu.vector_store %arg4[%c0_24, %c0_25, %c0_26], %71 {strides = array<i32>} : memref<1x16x32xf32, #tpu.memory_space<vmem>>, vector<1x16x32xf32>,
    return
  }
  func.func @transform_0(%arg0: i32) -> (i32, i32, i32) {
    %c0_i32 = arith.constant 0 : i32
    %c0_i32_0 = arith.constant 0 : i32
    %c0_i32_1 = arith.constant 0 : i32
    return %arg0, %c0_i32, %c0_i32_0 : i32, i32, i32
  }
  func.func @transform_1(%arg0: i32) -> (i32, i32, i32) {
    %c0_i32 = arith.constant 0 : i32
    %c0_i32_0 = arith.constant 0 : i32
    %c0_i32_1 = arith.constant 0 : i32
    return %arg0, %c0_i32, %c0_i32_0 : i32, i32, i32
  }
  func.func @transform_2(%arg0: i32) -> (i32, i32, i32) {
    %c0_i32 = arith.constant 0 : i32
    %c0_i32_0 = arith.constant 0 : i32
    %c0_i32_1 = arith.constant 0 : i32
    return %arg0, %c0_i32, %c0_i32_0 : i32, i32, i32
  }
  func.func @transform_3(%arg0: i32) -> (i32, i32, i32) {
    %c0_i32 = arith.constant 0 : i32
    %c0_i32_0 = arith.constant 0 : i32
    %c0_i32_1 = arith.constant 0 : i32
    return %arg0, %c0_i32, %c0_i32_0 : i32, i32, i32
  }
}

</mosaic_0001>

<bundles_post_ra>
// kernel: tpu_custom_call.1
= control target key start
LH: loop header
LB: loop body
LE: loop exit
PB: predicated region body
PF: predicated region fallthrough
CT: control target
= control target key end

     0   :  { %s2103_s0 = inlined_call_operand.hbm [shape: f32[2,16,32], index: 0, kind: input, shape index: {}]   ;;  %s2104_s1 = inlined_call_operand.hbm [shape: f32[2,16,32], index: 1, kind: input, shape index: {}]   ;;  %s2105_s2 = inlined_call_operand.hbm [shape: f32[2,16,32], index: 2, kind: input, shape index: {}]   ;;  %s2106_s3 = inlined_call_operand.hbm [shape: f32[2,16,32], index: 3, kind: output, shape index: {}]  }
   0x1   :  { %2113 = sst [smem:[#allocation12_spill]] %s2103_s0 }
   0x2   :  { %8 = vsyncpa [#allocation3], 0 }
   0x3   :  { %10 = vsyncpa [#allocation3 + $0x1], 0 }
   0x4   :  { %11 = vsyncpa [#allocation6], 0 }
   0x5   :  { %13 = vsyncpa [#allocation6 + $0x1], 0 }
   0x6   :  { %14 = vsyncpa [#allocation4], 0 }
   0x7   :  { %16 = vsyncpa [#allocation4 + $0x1], 0  ;;  %s1732_s12 = smov 0   ;;  %s1734_s13 = smov 0  }
   0x8   :  { %s1736_s14 = smov 0   ;;  %s1738_s15 = smov 0  }
   0x9 LB: > { %s1753_s16 = sadd.s32 4294967295, %s1697_s15   ;;  %s1232_s17 = sadd.s32 4294967294, %s1697_s15   ;;  %s1697_s15 = sphi %s1738_s15, %s2134_s15   ;;  %s1693_s14 = sphi %s1736_s14, %s2133_s14   ;;  %s1689_s13 = sphi %s1734_s13, %s2132_s13   ;;  %s1685_s12 = sphi %s1732_s12, %s2131_s12  }
   0xa   : > { %s1757_s18 = sadd.s32 1, %s1697_s15   ;;  %s29_s19 = sadd.s32 1, %s1693_s14 }
   0xb   : > { %s26_s20 = ssub.s32 %s1697_s15, %s1757_s18  ;;  %p36_p0 = scmp.ne.s32.totalorder %s1693_s14, %s1689_s13 }
   0xc   : > { %p27_p1 = scmp.eq.s32.totalorder %s26_s20, 0  ;;  %p37_p2 = scmp.eq.s32.totalorder %s1697_s15, 0 }
   0xd   : > { %p42_p3 = scmp.ne.s32.totalorder %s1689_s13, %s1685_s12  ;;  %p43_p4 = scmp.eq.s32.totalorder %s1753_s16, 0 }
   0xe   : > { %s1769_s21 = scalar_select %p27_p1, %s1693_s14, %s29_s19  }
   0xf   : > { %p38_p5 = por %p37_p2, %p36_p0  ;;  %p1771_p6 = por %p43_p4, %p42_p3 }
  0x10   : > { %p118_p7 = scmp.eq.s32.totalorder %s1753_s16, 1  ;;  %p124_p8 = scmp.eq.s32.totalorder %s1232_s17, 1 }
  0x11   : > { %s2114_s22 = scalar_select %p1771_p6, 1, 0 }
  0x12   : > { %p1432_p10 = scmp.lt.s32.totalorder %s1697_s15, 2  ;;  %p1778_p11 = por %p118_p7, %p36_p0 }
  0x13   : > { %p1782_p12 = por %p124_p8, %p42_p3  ;;  %s144_s25 = sand.u32 1, %s1693_s14  }
  0x14   : > { %s2115_s23 = scalar_select %p1778_p11, 1, 0 }
  0x15   : > { %s2116_s24 = scalar_select %p1782_p12, 1, 0 }
  0x16   : > { %s1788_s26 = sshll.u32 %s1697_s15, 8  ;;  %s1792_s27 = sshll.u32 %s144_s25, 4 }
  0x17   : > { %p1794_p13 = pnand %p1432_p10, %p38_p5  ;;  %s165_s29 = sand.u32 1, %s1697_s15  }
  0x18   : > { %s1803_s5 = scalar_lea.hbm %s2104_s1, %s1788_s26  ;;  %s169_s6 = scalar_lea.vmem [#allocation5], %s1792_s27 }
  0x19   : > { %s176_s7 = sshll.u32 %s169_s6, 4  ;;  %s1809_s8 = scalar_lea.sflag [#allocation6], %s165_s29  ;;  %s1806_s7 = int_to_ptr.vmem [resolvable:$true] %s176_s7 }
  0x1a   : > { %s1537_s9 = scalar_lea.hbm %s1803_s5, 256  ;;  %p1815_p2 = pneg %p1794_p13 }
  0x1b   : > { %p1538_p1 = scmp.ne.s32.totalorder %s1803_s5, %s1537_s9  ;;  %s1542_s19 = scalar_lea.hbm %s2104_s1, 512 }
  0x1c   : > { %p1543_p5 = scmp.lt.u32.totalorder %s1803_s5, %s2104_s1  ;;  %p1544_p7 = scmp.lt.u32.totalorder %s1542_s19, %s1537_s9 }
  0x1d   : > { %p1540_p3 = pnand %p1815_p2, %p1538_p1  ;;  %p1546_p10 = scmp.lt.u32.totalorder %s1537_s9, %s1803_s5 }
  0x1e   : > { %p1545_p8 = por %p1544_p7, %p1543_p5 }
  0x1f   : > { %p1541_p4 = pneg %p1540_p3 }
  0x20   : > { %p1547_p9 = por %p1546_p10, %p1545_p8 }
  0x22   : > { %p1548_p0 = pnand %p1547_p9, %p1541_p4 }
  0x24   : > { %1551 = shalt.err (!%p1548_p0)
}
  0x25   : > { %s1552_s29 = scalar_lea.vmem %s1806_s7, 256  ;;  %s1699_s4 = smov [#allocation5]  }
  0x26   : > { %p1553_p1 = scmp.ne.s32.totalorder %s1806_s7, %s1552_s29  ;;  %s1557_s6 = sshll.u32 %s1699_s4, 4  ;;  %s1558_s6 = int_to_ptr.vmem [resolvable:$false] %s1557_s6 }
  0x27   : > { %s1559_s11 = scalar_lea.vmem %s1558_s6, 512  ;;  %p1560_p11 = scmp.lt.s32.totalorder %s1806_s7, %s1558_s6 }
  0x28   : > { %p1555_p3 = pnand %p1553_p1, %p1815_p2  ;;  %p1561_p6 = scmp.lt.s32.totalorder %s1559_s11, %s1552_s29 }
  0x2a   : > { %p1556_p12 = pneg %p1555_p3  ;;  %p1562_p5 = por %p1561_p6, %p1560_p11 }
  0x2c   : > { %p1563_p7 = pnand %p1562_p5, %p1556_p12 }
  0x2e   : > { %1566 = shalt.err (!%p1563_p7)
}
  0x2f   : > { %s2109_s9 = smov 128   ;;  %s2111_s17 = smov 8  }
  0x30   : > { %1424 = dma.hbm_to_vmem [thread:$0]  (!%p1794_p13), %s1803_s5, 256, %s1806_s7, %s1809_s8, %s2109_s9, %s2109_s9, %s2111_s17  }
  0x31   : > { %p205_p6 = scmp.lt.s32.totalorder %s1697_s15, 3  ;;  %s2119_s0 = sld [smem:[#allocation12_spill]] }
  0x32   : > { %p2120_p9 = scmp.ge.s32.totalorder %s1697_s15, 1  ;;  %s148_s4 = scalar_lea.vmem [#allocation2], %s1792_s27 }
  0x33   : > { %s155_s6 = sshll.u32 %s148_s4, 4  ;;  %s1860_s5 = scalar_lea.sflag [#allocation3], %s144_s25  ;;  %s1856_s6 = int_to_ptr.vmem [resolvable:$true] %s155_s6 }
  0x34   : > { %p1851_p11 = pnand %p2120_p9, %p205_p6 }
  0x36   : > { %s2121_s29 = scalar_select %p1851_p11, 1, 0 }
  0x37   : > { %s1847_s30 = scalar_lea.hbm %s2119_s0, %s1788_s26  ;;  %s1572_s20 = scalar_lea.hbm %s2119_s0, 512 }
  0x38   : > { %s1567_s7 = scalar_lea.hbm %s1847_s30, 256  ;;  %p1573_p8 = scmp.lt.u32.totalorder %s1847_s30, %s2119_s0 }
  0x39   : > { %p1568_p12 = scmp.ne.s32.totalorder %s1847_s30, %s1567_s7  ;;  %p1574_p10 = scmp.lt.u32.totalorder %s1572_s20, %s1567_s7 }
  0x3a   : > { %p1576_p3 = scmp.lt.u32.totalorder %s1567_s7, %s1847_s30 }
  0x3b   : > { %p1570_p0 = pnand %p1568_p12, %p1815_p2  ;;  %p1575_p1 = por %p1574_p10, %p1573_p8 }
  0x3d   : > { %p1571_p4 = pneg %p1570_p0  ;;  %p1577_p5 = por %p1576_p3, %p1575_p1 }
  0x3f   : > { %p1578_p7 = pnand %p1577_p5, %p1571_p4 }
  0x41   : > { %1581 = shalt.err (!%p1578_p7)
}
  0x42   : > { %s1582_s25 = scalar_lea.vmem %s1856_s6, 256  ;;  %s1702_s4 = smov [#allocation2]  }
  0x43   : > { %p1583_p6 = scmp.ne.s32.totalorder %s1856_s6, %s1582_s25  ;;  %s1587_s11 = sshll.u32 %s1702_s4, 4  ;;  %s1588_s11 = int_to_ptr.vmem [resolvable:$false] %s1587_s11 }
  0x44   : > { %s1589_s9 = scalar_lea.vmem %s1588_s11, 512  ;;  %p1590_p0 = scmp.lt.s32.totalorder %s1856_s6, %s1588_s11 }
  0x45   : > { %p1585_p9 = pnand %p1583_p6, %p1815_p2  ;;  %p1591_p11 = scmp.lt.s32.totalorder %s1589_s9, %s1582_s25 }
  0x47   : > { %p1586_p12 = pneg %p1585_p9  ;;  %p1592_p8 = por %p1591_p11, %p1590_p0 }
  0x49   : > { %p1593_p10 = pnand %p1592_p8, %p1586_p12 }
  0x4b   : > { %1596 = shalt.err (!%p1593_p10)
}
  0x4c   : > { %s2122_s17 = smov 8   ;;  %s2123_s7 = smov 128  }
  0x4d   : > { %1421 = dma.hbm_to_vmem [thread:$0]  (!%p1794_p13), %s1847_s30, 256, %s1856_s6, %s1860_s5, %s2123_s7, %s2123_s7, %s2122_s17  }
  0x4e   : > { %s1891_s4 = scalar_lea.hbm %s2105_s2, %s1788_s26  ;;  %s190_s25 = scalar_lea.vmem [#allocation7], %s1792_s27 }
  0x4f   : > { %s197_s11 = sshll.u32 %s190_s25, 4  ;;  %s1597_s9 = scalar_lea.hbm %s1891_s4, 256  ;;  %s1894_s11 = int_to_ptr.vmem [resolvable:$true] %s197_s11 }
  0x50   : > { %p1598_p11 = scmp.ne.s32.totalorder %s1891_s4, %s1597_s9  ;;  %s1602_s6 = scalar_lea.hbm %s2105_s2, 512 }
  0x51   : > { %p1603_p3 = scmp.lt.u32.totalorder %s1891_s4, %s2105_s2  ;;  %p1604_p5 = scmp.lt.u32.totalorder %s1602_s6, %s1597_s9 }
  0x52   : > { %p1600_p4 = pnand %p1598_p11, %p1815_p2  ;;  %p1606_p6 = scmp.lt.u32.totalorder %s1597_s9, %s1891_s4 }
  0x53   : > { %p1605_p7 = por %p1604_p5, %p1603_p3 }
  0x54   : > { %p1601_p1 = pneg %p1600_p4 }
  0x55   : > { %p1607_p9 = por %p1606_p6, %p1605_p7 }
  0x57   : > { %p1608_p12 = pnand %p1607_p9, %p1601_p1 }
  0x59   : > { %1611 = shalt.err (!%p1608_p12)
}
  0x5a   : > { %s1612_s27 = scalar_lea.vmem %s1894_s11, 256  ;;  %s1703_s0 = smov [#allocation7]  }
  0x5b   : > { %p1613_p0 = scmp.ne.s32.totalorder %s1894_s11, %s1612_s27  ;;  %s1617_s19 = sshll.u32 %s1703_s0, 4  ;;  %s1618_s19 = int_to_ptr.vmem [resolvable:$false] %s1617_s19 }
  0x5c   : > { %s1619_s20 = scalar_lea.vmem %s1618_s19, 512  ;;  %p1620_p11 = scmp.lt.s32.totalorder %s1894_s11, %s1618_s19 }
  0x5d   : > { %p1615_p8 = pnand %p1613_p0, %p1815_p2  ;;  %p1621_p4 = scmp.lt.s32.totalorder %s1619_s20, %s1612_s27 }
  0x5f   : > { %p1616_p10 = pneg %p1615_p8  ;;  %p1622_p3 = por %p1621_p4, %p1620_p11 }
  0x61   : > { %p1623_p5 = pnand %p1622_p3, %p1616_p10 }
  0x63   : > { %1626 = shalt.err (!%p1623_p5)
}
  0x64   : > { %1427 = dma.hbm_to_vmem [thread:$0]  (!%p1794_p13), %s1891_s4, 256, %s1894_s11, %s1809_s8, %s2123_s7, %s2123_s7, %s2122_s17  }
  0x65   : > { %p2124_p2 = scmp.ne.s32.totalorder %s2121_s29, 0 }
  0x66   : > { %s1924_s10 = sand.u32 (!%p2124_p2), 1, %s1689_s13   ;;  %p2125_p1 = scmp.ne.s32.totalorder (!%p2124_p2), %s2114_s22, 0 }
  0x67   : > { %209 = sbr.rel (%p2124_p2) target bundleno = 1990 (0x7c6), region = 32  ;;  %s1927_s25 = sshll.u32 (!%p2124_p2), %s1924_s10, 4 }
  0x68   : > { %s212_s28 = scalar_lea.sflag (!%p2124_p2), [#allocation3], %s1924_s10  ;;  %s215_s9 = scalar_lea.vmem (!%p2124_p2), [#allocation2], %s1927_s25 }
  0x6e   : > { %1672 = dma.done.wait (%p2125_p1), %s212_s28, 256  }
  0x6f   : > { %1674 = vsyncadd (%p2125_p1), %s212_s28, 4294967040  ;;  %s220_s8 = sand.u32 1, %s1753_s16   ;;  %s224_s17 = scalar_lea.vmem [#allocation5], %s1927_s25 }
  0x70   : > { %s221_s29 = scalar_lea.sflag [#allocation6], %s220_s8 }
  0x71   : > { %1676 = dma.done.wait (%p2125_p1), %s221_s29, 512  }
  0x72   : > { %1678 = vsyncadd (%p2125_p1), %s221_s29, 4294966784  ;;  %vm274_vm0 = vcmask 64512   ;;  %v268_v1 = vld [vmem:[%s224_s17] sm:$0xff]  ;;  %v269_v2 = vld [vmem:[%s224_s17 + $0x8] sm:$0xff]  ;;  %s1704_s22 = smov 120   ;;  %vm362_vm2 = vcmask 130048  }
  0x73   : > { %vm1943_vm1 = vmpackc.low %vm274_vm0, %vm274_vm0  ;;  %v266_v3 = vld [vmem:[%s215_s9] sm:$0xff]  ;;  %v1370_v4 = vpack.c.bf16 %v269_v2, %v268_v1  ;;  %v267_v6 = vld [vmem:[%s215_s9 + $0x8] sm:$0xff]  ;;  %v1959_v8 = vpack.i.bf16 %v269_v2, %v268_v1  ;;  %s233_s7 = scalar_lea.vmem [#allocation7], %s1927_s25  ;;  %s1705_s4 = smov 112   ;;  %vm1096_vm3 = vcmask 195584   ;;  %vm1099_vm4 = vcmask 261120  }
  0x74   : > { %v1947_v5 = vmul.f32 0.35355338, %v266_v3  ;;  %v1955_v7 = vmul.f32 0.35355338, %v267_v6  ;;  %v270_v13 = vld [vmem:[%s233_s7] sm:$0xff]  ;;  %v271_v14 = vld [vmem:[%s233_s7 + $0x8] sm:$0xff] }
  0x75   : > { %1372 = vmatprep.subr.msk.bf16.mxu0 %vm1943_vm1, %v1370_v4  ;;  %1476 = vrot.lane.b32.xlu1 %v1959_v8, %s1704_s22  ;;  %v1376_v15 = vpack.c.bf16 %v271_v14, %v270_v13  ;;  %v1969_v20 = vpack.i.bf16 %v271_v14, %v270_v13  ;;  %s1706_s11 = smov 104   ;;  %s1707_s30 = smov 16  }
  0x76   : > { %1318 = vmatprep.mubr.msk.f32.mxu0 %vm274_vm0, %v1947_v5  ;;  %1375 = vmatpush3.bf16.xpose.msk.msra.mxu0 %vm1943_vm1, %v1370_v4  ;;  %s1708_s6 = smov 8   ;;  %s1709_s5 = smov 24  }
  0x77   : > { %1377 = vmatprep.subr.bf16.mxu1 %v1376_v15  ;;  %s265_s26 = scalar_lea.vmem [#allocation8], %s1927_s25  ;;  %s1281_s0 = sshll.u32 %s1753_s16, 8 }
  0x78   : > { %1379 = vmatpush3.bf16.msra.mxu1 %v1376_v15  ;;  %s1116_s27 = sshll.u32 %s265_s26, 4  ;;  %s2058_s25 = scalar_lea.hbm %s2106_s3, %s1281_s0  ;;  %s2052_s27 = int_to_ptr.vmem [resolvable:$true] %s1116_s27 }
  0x79   : > { %466 = vrot.lane.b32.xlu1 %v1947_v5, %s1704_s22  ;;  %s1103_s28 = scalar_lea.sflag [#allocation4], %s1924_s10  ;;  %s1627_s9 = scalar_lea.vmem %s2052_s27, 256 }
  0x7a   : > { %p1628_p13 = scmp.ne.s32.totalorder %s2052_s27, %s1627_s9  ;;  %p2128_p7 = scmp.ne.s32.totalorder %s2115_s23, 0 }
  0x7b   : > { %s1710_s16 = smov [#allocation8]  }
  0x7c   : > { %p1629_p6 = pnand %p1628_p13, %p2128_p7  ;;  %s1631_s8 = sshll.u32 %s1710_s16, 4  ;;  %s1632_s8 = int_to_ptr.vmem [resolvable:$false] %s1631_s8 }
  0x7d   : > { %1319 = vmatmul.mubr.msk.f32.vlgmr.msra.gmra.mrb[0].mxu0 %vm274_vm0, %v1955_v7  ;;  %1481 = vrot.lane.b32.xlu1 %v1969_v20, %s1704_s22  ;;  %s1633_s29 = scalar_lea.vmem %s1632_s8, 512  ;;  %p1634_p12 = scmp.lt.s32.totalorder %s2052_s27, %s1632_s8 }
  0x7e   : > { %p1630_p9 = pneg %p1629_p6  ;;  %p1635_p0 = scmp.lt.s32.totalorder %s1633_s29, %s1627_s9 }
  0x80   : > { %p1636_p8 = por %p1635_p0, %p1634_p12 }
  0x82   : > { %p1637_p10 = pnand %p1636_p8, %p1630_p9 }
  0xe7   : > { %v1477_v16 = vpop.permute.xlu1 %1476 }
  0xe8   : > { %v1479_v17 = vunpack.i.h.bf16 %v1477_v16  ;;  %v1478_v18 = vunpack.i.l.bf16 %v1477_v16 }
  0xea   : > { %v1380_v19 = vpack.c.bf16 %v1479_v17, %v1478_v18 }
  0xeb   : > { %v467_v28 = vpop.permute.xlu1 %466 }
  0xec   : > { %1382 = vmatprep.subr.msk.bf16.mxu1 %vm1943_vm1, %v1380_v19 }
  0xef   : > { %v1482_v31 = vpop.permute.xlu1 %1481 }
  0xf0   : > { %v1484_v32 = vunpack.i.h.bf16 %v1482_v31  ;;  %v1483_v33 = vunpack.i.l.bf16 %v1482_v31 }
  0xf2   : > { %v1386_v34 = vpack.c.bf16 %v1484_v32, %v1483_v33 }
  0xf4   : > { %1387 = vmatprep.subr.bf16.mxu0 %v1386_v34 }
  0xf5   : > { %1389 = vmatpush3.bf16.msra.mxu0 %v1386_v34 }
 0x150   : > { %v1320_v9 = vpop.f32.mrb[0].mxu0 }
 0x151   : > { %v353_v10 = vpop.f32.mrb[1].mxu0  ;;  %v366_v12 = vsel %vm362_vm2, %v1320_v9, -inf }
 0x152   : > { %v363_v11 = vsel %vm362_vm2, %v353_v10, -inf }
 0x153   : > { %364 = vmax.xlane.f32.xlu0 %v363_v11 }
 0x157   : > { %367 = vmax.xlane.f32.xlu0 %v366_v12 }
 0x16d   : > { %468 = vrot.lane.b32.xlu0 %v1955_v7, %s1704_s22 }
 0x1e0   : > { %v365_v21 = vpop.xlane.xlu0 %364 }
 0x1e1   : > { %v369_v22 = vsub.f32 %v353_v10, %v365_v21 }
 0x1e3   : > { %v371_v23 = vmul.f32 1.442695, %v369_v22 }
 0x1e4   : > { %v368_v24 = vpop.xlane.xlu0 %367 }
 0x1e5   : > { %1505 = vpow2.f32 %v371_v23  ;;  %v370_v25 = vsub.f32 %v1320_v9, %v368_v24 }
 0x1e7   : > { %v373_v26 = vmul.f32 1.442695, %v370_v25 }
 0x1e8   : > { %v469_v30 = vpop.permute.xlu0 %468 }
 0x1e9   : > { %1507 = vpow2.f32 %v373_v26 }
 0x1ef   : > { %v1972_v27 = vpop.eup %1505 }
 0x1f0   : > { %1325 = vmatprep.mubr.msk.f32.mxu1 %vm362_vm2, %v1972_v27 }
 0x1f3   : > { %v1976_v29 = vpop.eup %1507 }
 0x1f4   : > { %1326 = vmatmul.mubr.msk.f32.vlgmr.msra.gmra.mrb[0].mxu1 %vm362_vm2, %v1976_v29 }
 0x1f5   : > { %1385 = vmatpush3.bf16.xpose.msk.msra.mxu1 %vm1943_vm1, %v1380_v19  ;;  %1332 = vmatprep.mubr.msk.f32.mxu1 %vm274_vm0, %v467_v28 }
 0x1fc   : > { %1333 = vmatmul.mubr.msk.f32.vlgmr.msra.gmra.mrb[2].mxu1 %vm274_vm0, %v469_v30 }
 0x2c7   : > { %v1984_v35 = vpop.f32.mrb[0].mxu1 }
 0x2c8   : > { %v1986_v36 = vpop.f32.mrb[1].mxu1 }
 0x2cf   : > { %v1334_v37 = vpop.f32.mrb[2].mxu1 }
 0x2d0   : > { %v548_v38 = vpop.f32.mrb[3].mxu1  ;;  %v560_v39 = vsel %vm362_vm2, %v1334_v37, -inf }
 0x2d1   : > { %561 = vmax.xlane.f32.xlu0 %v560_v39  ;;  %v557_v40 = vsel %vm362_vm2, %v548_v38, -inf }
 0x2d2   : > { %558 = vmax.xlane.f32.xlu1 %v557_v40 }
 0x2e3   : > { %668 = vrot.lane.b32.xlu1 %v1947_v5, %s1705_s4 }
 0x2e7   : > { %1486 = vrot.lane.b32.xlu0 %v1959_v8, %s1705_s4  ;;  %670 = vrot.lane.b32.xlu1 %v1955_v7, %s1705_s4 }
 0x2eb   : > { %1491 = vrot.lane.b32.xlu1 %v1969_v20, %s1705_s4 }
 0x35e   : > { %v562_v41 = vpop.xlane.xlu0 %561 }
 0x35f   : > { %v564_v42 = vsub.f32 %v1334_v37, %v562_v41  ;;  %v559_v43 = vpop.xlane.xlu1 %558 }
 0x360   : > { %v563_v44 = vsub.f32 %v548_v38, %v559_v43 }
 0x361   : > { %v567_v45 = vmul.f32 1.442695, %v564_v42 }
 0x362   : > { %v565_v46 = vmul.f32 1.442695, %v563_v44  ;;  %v1487_v47 = vpop.permute.xlu0 %1486 }
 0x363   : > { %v1489_v48 = vunpack.i.h.bf16 %v1487_v47  ;;  %v1488_v49 = vunpack.i.l.bf16 %v1487_v47  ;;  %v669_v52 = vpop.permute.xlu1 %668  ;;  %v378_v47 = vsel %vm362_vm2, %v1976_v29, 0.0 }
 0x364   : > { %1509 = vpow2.f32 %v565_v46  ;;  %v375_v46 = vsel %vm362_vm2, %v1972_v27, 0.0 }
 0x365   : > { %1511 = vpow2.f32 %v567_v45  ;;  %v1390_v50 = vpack.c.bf16 %v1489_v48, %v1488_v49 }
 0x367   : > { %1392 = vmatprep.subr.msk.bf16.mxu0 %vm1943_vm1, %v1390_v50  ;;  %v671_v54 = vpop.permute.xlu1 %670 }
 0x36b   : > { %v1492_v55 = vpop.permute.xlu1 %1491 }
 0x36c   : > { %v1494_v56 = vunpack.i.h.bf16 %v1492_v55  ;;  %v1493_v57 = vunpack.i.l.bf16 %v1492_v55 }
 0x36e   : > { %v1510_v51 = vpop.eup %1509  ;;  %v1396_v58 = vpack.c.bf16 %v1494_v56, %v1493_v57 }
 0x36f   : > { %v1512_v53 = vpop.eup %1511  ;;  %1339 = vmatprep.mubr.msk.f32.mxu0 %vm362_vm2, %v1510_v51  ;;  %v569_v23 = vsel %vm362_vm2, %v1510_v51, 0.0 }
 0x370   : > { %1340 = vmatmul.mubr.msk.f32.vlgmr.msra.gmra.mrb[2].mxu0 %vm362_vm2, %v1512_v53  ;;  %1397 = vmatprep.subr.bf16.mxu1 %v1396_v58  ;;  %v572_v0 = vsel %vm362_vm2, %v1512_v53, 0.0 }
 0x371   : > { %1395 = vmatpush3.bf16.xpose.msk.msra.mxu0 %vm1943_vm1, %v1390_v50  ;;  %1346 = vmatprep.mubr.msk.f32.mxu0 %vm274_vm0, %v669_v52 }
 0x372   : > { %1399 = vmatpush3.bf16.msra.mxu1 %v1396_v58 }
 0x378   : > { %1347 = vmatmul.mubr.msk.f32.vlgmr.msra.gmra.mrb[4].mxu0 %vm274_vm0, %v671_v54 }
 0x443   : > { %v2002_v59 = vpop.f32.mrb[2].mxu0 }
 0x444   : > { %v2004_v60 = vpop.f32.mrb[3].mxu0 }
 0x44b   : > { %v1348_v61 = vpop.f32.mrb[4].mxu0 }
 0x44c   : > { %v750_v62 = vpop.f32.mrb[5].mxu0  ;;  %v762_v63 = vsel %vm362_vm2, %v1348_v61, -inf }
 0x44d   : > { %763 = vmax.xlane.f32.xlu0 %v762_v63  ;;  %v759_v1 = vsel %vm362_vm2, %v750_v62, -inf }
 0x44e   : > { %760 = vmax.xlane.f32.xlu1 %v759_v1 }
 0x45f   : > { %868 = vrot.lane.b32.xlu1 %v1947_v5, %s1706_s11 }
 0x463   : > { %1496 = vrot.lane.b32.xlu0 %v1959_v8, %s1706_s11  ;;  %870 = vrot.lane.b32.xlu1 %v1955_v7, %s1706_s11 }
 0x4da   : > { %v764_v2 = vpop.xlane.xlu0 %763 }
 0x4db   : > { %v766_v3 = vsub.f32 %v1348_v61, %v764_v2  ;;  %v761_v4 = vpop.xlane.xlu1 %760 }
 0x4dc   : > { %v765_v6 = vsub.f32 %v750_v62, %v761_v4 }
 0x4dd   : > { %v769_v9 = vmul.f32 1.442695, %v766_v3 }
 0x4de   : > { %v767_v10 = vmul.f32 1.442695, %v765_v6  ;;  %v1497_v11 = vpop.permute.xlu0 %1496 }
 0x4df   : > { %v1499_v12 = vunpack.i.h.bf16 %v1497_v11  ;;  %v1498_v13 = vunpack.i.l.bf16 %v1497_v11  ;;  %v869_v8 = vpop.permute.xlu1 %868 }
 0x4e0   : > { %1513 = vpow2.f32 %v767_v10 }
 0x4e1   : > { %1515 = vpow2.f32 %v769_v9  ;;  %v1400_v14 = vpack.c.bf16 %v1499_v12, %v1498_v13 }
 0x4e3   : > { %1402 = vmatprep.subr.msk.bf16.mxu1 %vm1943_vm1, %v1400_v14  ;;  %v871_v7 = vpop.permute.xlu1 %870 }
 0x4ea   : > { %v1514_v5 = vpop.eup %1513 }
 0x4eb   : > { %v1516_v15 = vpop.eup %1515  ;;  %1353 = vmatprep.mubr.msk.f32.mxu1 %vm362_vm2, %v1514_v5  ;;  %v771_v24 = vsel %vm362_vm2, %v1514_v5, 0.0 }
 0x4ec   : > { %1354 = vmatmul.mubr.msk.f32.vlgmr.msra.gmra.mrb[4].mxu1 %vm362_vm2, %v1516_v15  ;;  %v774_v25 = vsel %vm362_vm2, %v1516_v15, 0.0 }
 0x4ed   : > { %1405 = vmatpush3.bf16.xpose.msk.msra.mxu1 %vm1943_vm1, %v1400_v14  ;;  %1360 = vmatprep.mubr.msk.f32.mxu1 %vm274_vm0, %v869_v8 }
 0x4f4   : > { %1361 = vmatmul.mubr.msk.f32.vlgmr.msra.gmra.mrb[6].mxu1 %vm274_vm0, %v871_v7 }
 0x5bf   : > { %v2022_v16 = vpop.f32.mrb[4].mxu1 }
 0x5c0   : > { %v855_v17 = vpop.f32.mrb[5].mxu1 }
 0x5c7   : > { %v1362_v18 = vpop.f32.mrb[6].mxu1 }
 0x5c8   : > { %v950_v19 = vpop.f32.mrb[7].mxu1  ;;  %v962_v21 = vsel %vm362_vm2, %v1362_v18, -inf }
 0x5c9   : > { %963 = vmax.xlane.f32.xlu0 %v962_v21  ;;  %v959_v22 = vsel %vm362_vm2, %v950_v19, -inf }
 0x5ca   : > { %960 = vmax.xlane.f32.xlu1 %v959_v22 }
 0x5cd   : > { %570 = vadd.xlane.f32.xlu0 %v569_v23 }
 0x5d1   : > { %573 = vadd.xlane.f32.xlu0 %v572_v0 }
 0x5d5   : > { %772 = vadd.xlane.f32.xlu0 %v771_v24 }
 0x5d9   : > { %775 = vadd.xlane.f32.xlu0 %v774_v25 }
 0x5db   : > { %1501 = vrot.lane.b32.xlu1 %v1969_v20, %s1706_s11 }
 0x656   : > { %v964_v26 = vpop.xlane.xlu0 %963 }
 0x657   : > { %v966_v28 = vsub.f32 %v1362_v18, %v964_v26  ;;  %v961_v30 = vpop.xlane.xlu1 %960 }
 0x658   : > { %v965_v31 = vsub.f32 %v950_v19, %v961_v30 }
 0x659   : > { %v969_v32 = vmul.f32 1.442695, %v966_v28 }
 0x65a   : > { %v967_v33 = vmul.f32 1.442695, %v965_v31  ;;  %v571_v34 = vpop.xlane.xlu0 %570 }
 0x65b   : > { %1517 = vpow2.f32 %v969_v32  ;;  %v1502_v37 = vpop.permute.xlu1 %1501 }
 0x65c   : > { %1519 = vpow2.f32 %v967_v33  ;;  %v1504_v38 = vunpack.i.h.bf16 %v1502_v37  ;;  %v1503_v39 = vunpack.i.l.bf16 %v1502_v37 }
 0x65e   : > { %v1406_v40 = vpack.c.bf16 %v1504_v38, %v1503_v39  ;;  %v574_v41 = vpop.xlane.xlu0 %573 }
 0x660   : > { %1407 = vmatprep.subr.bf16.mxu0 %v1406_v40 }
 0x661   : > { %1409 = vmatpush3.bf16.msra.mxu0 %v1406_v40 }
 0x662   : > { %v773_v44 = vpop.xlane.xlu0 %772 }
 0x663   : > { %1521 = vrcp.f32 %v773_v44 }
 0x664   : > { %1523 = vrcp.f32 %v571_v34 }
 0x665   : > { %v1518_v42 = vpop.eup %1517  ;;  %1525 = vrcp.f32 %v574_v41 }
 0x666   : > { %v1520_v43 = vpop.eup %1519  ;;  %v974_v20 = vsel %vm362_vm2, %v1518_v42, 0.0  ;;  %v776_v50 = vpop.xlane.xlu0 %775 }
 0x667   : > { %975 = vadd.xlane.f32.xlu1 %v974_v20  ;;  %1367 = vmatprep.mubr.msk.f32.mxu0 %vm362_vm2, %v1520_v43  ;;  %v971_v45 = vsel %vm362_vm2, %v1520_v43, 0.0  ;;  %1527 = vrcp.f32 %v776_v50 }
 0x668   : > { %972 = vadd.xlane.f32.xlu0 %v971_v45  ;;  %1368 = vmatmul.mubr.msk.f32.vlgmr.msra.gmra.mrb[6].mxu0 %vm362_vm2, %v1518_v42 }
 0x66c   : > { %376 = vadd.xlane.f32.xlu0 %v375_v46 }
 0x66d   : > { %v1522_v48 = vpop.eup %1521 }
 0x66e   : > { %v866_v49 = vmul.f32 %v1522_v48, %v855_v17  ;;  %v1524_v51 = vpop.eup %1523 }
 0x66f   : > { %v666_v52 = vmul.f32 %v1524_v51, %v2004_v60  ;;  %v1526_v53 = vpop.eup %1525 }
 0x670   : > { %379 = vadd.xlane.f32.xlu0 %v378_v47  ;;  %v667_v27 = vmul.f32 %v1526_v53, %v2002_v59 }
 0x671   : > { %v1528_v54 = vpop.eup %1527 }
 0x672   : > { %v867_v29 = vmul.f32 %v1528_v54, %v2022_v16 }
 0x678   : > { %1078 = vrot.lane.b32.xlu1 %v866_v49, %s1707_s30 }
 0x686   : > { %1070 = vrot.lane.b32.xlu0 %v666_v52, %s1708_s6 }
 0x68a   : > { %1072 = vrot.lane.b32.xlu0 %v667_v27, %s1708_s6 }
 0x68e   : > { %1080 = vrot.lane.b32.xlu0 %v867_v29, %s1707_s30 }
 0x6f4   : > { %v976_v56 = vpop.xlane.xlu1 %975 }
 0x6f5   : > { %v973_v55 = vpop.xlane.xlu0 %972 }
 0x6f6   : > { %1529 = vrcp.f32 %v973_v55 }
 0x6f7   : > { %1531 = vrcp.f32 %v976_v56 }
 0x6f8   : > { %v1079_v13 = vpop.permute.xlu1 %1078 }
 0x6f9   : > { %v377_v59 = vpop.xlane.xlu0 %376 }
 0x6fa   : > { %1533 = vrcp.f32 %v377_v59 }
 0x6fd   : > { %v380_v1 = vpop.xlane.xlu0 %379 }
 0x6fe   : > { %1535 = vrcp.f32 %v380_v1 }
 0x700   : > { %v1530_v58 = vpop.eup %1529 }
 0x701   : > { %v1532_v62 = vpop.eup %1531  ;;  %v1071_v2 = vpop.permute.xlu0 %1070 }
 0x704   : > { %v1534_v3 = vpop.eup %1533 }
 0x705   : > { %v1073_v4 = vpop.permute.xlu0 %1072  ;;  %v464_v6 = vmul.f32 %v1534_v3, %v1986_v36 }
 0x707   : > { %v1092_v11 = vsel %vm274_vm0, %v464_v6, %v1071_v2 }
 0x708   : > { %v1536_v9 = vpop.eup %1535  ;;  %v1094_v14 = vsel %vm362_vm2, %v1092_v11, %v1079_v13 }
 0x709   : > { %v1081_v10 = vpop.permute.xlu0 %1080  ;;  %v465_v12 = vmul.f32 %v1536_v9, %v1984_v35 }
 0x70b   : > { %v1093_v8 = vsel %vm274_vm0, %v465_v12, %v1073_v4 }
 0x70c   : > { %v1095_v35 = vsel %vm362_vm2, %v1093_v8, %v1081_v10 }
 0x73b   : > { %v1369_v57 = vpop.f32.mrb[6].mxu0 }
 0x73c   : > { %v1055_v61 = vpop.f32.mrb[7].mxu0  ;;  %v1067_v63 = vmul.f32 %v1532_v62, %v1369_v57 }
 0x73d   : > { %v1066_v60 = vmul.f32 %v1530_v58, %v1055_v61 }
 0x73f   : > { %1086 = vrot.lane.b32.xlu0 %v1066_v60, %s1709_s5 }
 0x743   : > { %1088 = vrot.lane.b32.xlu0 %v1067_v63, %s1709_s5 }
 0x7b1   : > { %v1087_v5 = vpop.permute.xlu0 %1086 }
 0x7b2   : > { %v1097_v15 = vsel %vm1096_vm3, %v1094_v14, %v1087_v5 }
 0x7b3   : > { %1100 = vst.msk [vmem:[%s265_s26] sm:$0xff] %vm1099_vm4, %v1097_v15 }
 0x7b5   : > { %v1089_v36 = vpop.permute.xlu0 %1088 }
 0x7b6   : > { %v1098_v7 = vsel %vm1096_vm3, %v1095_v35, %v1089_v36 }
 0x7b7   : > { %1101 = vst.msk [vmem:[%s265_s26 + $0x8] sm:$0xff] %vm1099_vm4, %v1098_v7 }
 0x7b8   : > { %1640 = shalt.err (!%p1637_p10)
}
 0x7b9   : > { %s1641_s17 = scalar_lea.hbm %s2058_s25, 256  ;;  %s1645_s4 = scalar_lea.hbm %s2106_s3, 512 }
 0x7ba   : > { %p1642_p11 = scmp.ne.s32.totalorder %s2058_s25, %s1641_s17  ;;  %p1646_p5 = scmp.lt.u32.totalorder %s2058_s25, %s2106_s3 }
 0x7bb   : > { %p1647_p2 = scmp.lt.u32.totalorder %s1645_s4, %s1641_s17  ;;  %p1649_p13 = scmp.lt.u32.totalorder %s1641_s17, %s2058_s25 }
 0x7bc   : > { %p1643_p4 = pnand %p1642_p11, %p2128_p7 }
 0x7bd   : > { %p1648_p1 = por %p1647_p2, %p1646_p5 }
 0x7be   : > { %p1644_p3 = pneg %p1643_p4 }
 0x7bf   : > { %p1650_p6 = por %p1649_p13, %p1648_p1 }
 0x7c1   : > { %p1651_p9 = pnand %p1650_p6, %p1644_p3 }
 0x7c3   : > { %1654 = shalt.err (!%p1651_p9)
}
 0x7c4   : > { %s1711_s5 = smov 128  }
 0x7c5   : > { %1416 = dma.vmem_to_hbm [thread:$0]  (%p2128_p7), %s2052_s27, 256, %s2058_s25, %s1103_s28, %s1711_s5, %s1711_s5, %s1708_s6  }
 0x7c6 PF: > { %s1131_s26 = sand.u32 1, %s1685_s12   ;;  %p2129_p12 = scmp.ne.s32.totalorder %s2116_s24, 0 }
 0x7c7   : > { %p2130_p0 = scmp.ge.s32.totalorder %s1697_s15, 2  ;;  %s1132_s0 = scalar_lea.sflag [#allocation4], %s1131_s26 }
 0x7c9   : > { %p1429_p8 = pnand %p2130_p0, %p2129_p12 }
 0x7cb   : > { %1680 = dma.done.wait (!%p1429_p8), %s1132_s0, 256  }
 0x7cc   : > { %1682 = vsyncadd (!%p1429_p8), %s1132_s0, 4294967040  ;;  %p19_p10 = scmp.ge.s32.totalorder %s1757_s18, 4   ;;  %s2131_s12 = smov %s1689_s13 }
 0x7cd   : > { %s2132_s13 = smov %s1693_s14  ;;  %s2133_s14 = smov %s1769_s21 }
 0x7ce   : > { %s2134_s15 = smov %s1757_s18  ;;  %21 = sbr.rel (!%p19_p10) target bundleno = 9 (0x9), region = 101 }
 0x7d5   :  { %1137 = vsyncpa [#allocation3], 1 }
 0x7d6   :  { %1139 = vsyncpa [#allocation3 + $0x1], 1 }
 0x7d7   :  { %1140 = vsyncpa [#allocation6], 1 }
 0x7d8   :  { %1142 = vsyncpa [#allocation6 + $0x1], 1 }
 0x7d9   :  { %1143 = vsyncpa [#allocation4], 1 }
 0x7da   :  { %1145 = vsyncpa [#allocation4 + $0x1], 1 }

</bundles_post_ra>
